<compile_context>
chip_gen: v7x
topology: tpu7x:2x2x1
jax: 0.10.0
libtpu: 0.0.40
codegen_flags: <defaults>
</compile_context>

<pallas_src>
import functools

import jax
import jax.numpy as jnp
from jax.experimental import pallas as pl
from jax.experimental.pallas import tpu as pltpu


# ----------------------------------------------------------------------------- kernel


def _spmm_act_kernel(a_ref, b_ref, bias_ref, o_ref, acc_ref, *, activation, d_valid):
    """acc += A_tile @ B_tile; at the last K step apply bias + activation and store."""
    k = pl.program_id(1)

    @pl.when(k == 0)
    def _():
        acc_ref[...] = jnp.zeros_like(acc_ref)

    # MXU accumulate in f32 (inputs are bf16 tiles).
    acc_ref[...] += jnp.dot(a_ref[...], b_ref[...], preferred_element_type=jnp.float32)

    @pl.when(k == pl.num_programs(1) - 1)
    def _():
        h = acc_ref[...] + bias_ref[...]
        if activation == "relu":
            h = jnp.maximum(h, 0.0)
        elif activation == "log_softmax":
            # Padded lanes (>= d_valid) must be excluded from the reduction.
            col = jax.lax.broadcasted_iota(jnp.int32, h.shape, 1)
            valid = col < d_valid
            hm = jnp.where(valid, h, -jnp.inf)
            m = jnp.max(hm, axis=1, keepdims=True)
            z = hm - m
            lse = jnp.log(jnp.sum(jnp.exp(z), axis=1, keepdims=True))
            h = jnp.where(valid, z - lse, 0.0)
        # activation == "none": plain A @ B + b
        o_ref[...] = h.astype(o_ref.dtype)


def _round_up(x, m):
    return ((x + m - 1) // m) * m


def tiled_spmm_act(a, b, bias, activation="none", *, tm=256, tk=1024):
    """act(a @ b + bias) with (row, K) tiling on TPU.

    a: (N, M) dense propagation matrix, b: (M, D) features, bias: (D,).
    Streams a/b as bf16, accumulates in f32, output lane-padded to 128 and sliced.
    tm/tk defaults fit v7x's 64 MiB VMEM; widen tk on v6e/v5e if desired.
    """
    n, m = a.shape
    m2, d = b.shape
    assert m == m2 and bias.shape == (d,)

    d_pad = _round_up(d, 128)              # lane-dense output stores
    tm = min(tm, _round_up(n, 16))         # sublane granularity safe for bf16 tiles
    tk = min(tk, _round_up(m, 128))
    n_pad = _round_up(n, tm)
    k_pad = _round_up(m, tk)

    a_p = jnp.pad(a.astype(jnp.bfloat16), ((0, n_pad - n), (0, k_pad - m)))
    b_p = jnp.pad(b.astype(jnp.bfloat16), ((0, k_pad - m), (0, d_pad - d)))
    bias_p = jnp.pad(bias.astype(jnp.float32), (0, d_pad - d)).reshape(1, d_pad)

    grid = (n_pad // tm, k_pad // tk)
    kernel = functools.partial(_spmm_act_kernel, activation=activation, d_valid=d)

    out = pl.pallas_call(
        kernel,
        out_shape=jax.ShapeDtypeStruct((n_pad, d_pad), jnp.float32),
        grid_spec=pltpu.PrefetchScalarGridSpec(
            num_scalar_prefetch=0,
            grid=grid,
            in_specs=[
                pl.BlockSpec((tm, tk), lambda i, k: (i, k)),       # A row/K slab
                pl.BlockSpec((tk, d_pad), lambda i, k: (k, 0)),    # XW K slab
                pl.BlockSpec((1, d_pad), lambda i, k: (0, 0)),     # bias (resident)
            ],
            out_specs=pl.BlockSpec((tm, d_pad), lambda i, k: (i, 0)),
            scratch_shapes=[pltpu.VMEM((tm, d_pad), jnp.float32)],  # f32 accumulator
        ),
        compiler_params=pltpu.CompilerParams(
            dimension_semantics=("parallel", "arbitrary"),
            vmem_limit_bytes=32 * 1024 * 1024,
        ),
    )(a_p, b_p, bias_p)
    return out[:n, :d]


# --------------------------------------------------------------------------- JAX glue


def build_gcn_adjacency(edge_index, num_nodes, dtype=jnp.float32):
    """Dense D^{-1/2}(A+I)D^{-1/2} matching torch_geometric GCNConv gcn_norm."""
    row, col = edge_index[0], edge_index[1]
    loop = jnp.arange(num_nodes, dtype=edge_index.dtype)
    row = jnp.concatenate([row, loop])
    col = jnp.concatenate([col, loop])
    ew = jnp.ones(row.shape[0], dtype=dtype)
    deg = jnp.zeros(num_nodes, dtype=dtype).at[col].add(ew)
    deg_inv_sqrt = jnp.where(deg > 0, 1.0 / jnp.sqrt(deg), 0.0)
    norm = deg_inv_sqrt[row] * deg_inv_sqrt[col]
    # out[col] += norm * x[row]  =>  A_hat[col, row] = norm
    return jnp.zeros((num_nodes, num_nodes), dtype=dtype).at[col, row].add(norm)


def build_plain_adjacency(edge_index, num_nodes, dtype=jnp.float32):
    # TODO(synk): create_sparse_adj_mat source unavailable; assuming binary symmetric
    # adjacency without self-loops (is_directed=False) for the random-index context.
    row, col = edge_index[0], edge_index[1]
    a = jnp.zeros((num_nodes, num_nodes), dtype=dtype).at[row, col].set(1.0)
    a = jnp.maximum(a, a.T)
    return a * (1.0 - jnp.eye(num_nodes, dtype=dtype))


def get_orders(zeroth, fst, snd, trd):
    z = jnp.maximum(zeroth, 0.0)
    f = jnp.maximum(fst, 0.0)
    s = jnp.maximum(snd, 0.0)
    t = jnp.maximum(trd, 0.0)
    tot = z + f + s + t + 1e-6
    return z / tot, f / tot, s / tot, t / tot


def joint_rigcn_forward(x, x_features, edge_index, params):
    n, d_idx = x.shape

    # ---- RICRD: random-index context over A, A^2 (no diag), A^3 (no diag) ----
    a1 = build_plain_adjacency(edge_index, n)
    no_diag = 1.0 - jnp.eye(n, dtype=a1.dtype)
    a2 = (a1 @ a1) * no_diag
    a3 = (a2 @ a1) * no_diag
    z0, z1, z2, z3 = get_orders(params["zeroth"], params["fst"], params["snd"], params["trd"])
    # Fuse the three hop-propagations into one tiled SpMM: [A | A^2 | A^3] @ stacked x.
    a_cat = jnp.concatenate([a1, a2, a3], axis=1)                      # (N, 3N)
    x_cat = jnp.concatenate(
        [z1 * x, z2 * jnp.roll(x, 1, axis=1), z3 * jnp.roll(x, 2, axis=1)], axis=0
    )                                                                   # (3N, d_idx)
    ctx = z0 * x + tiled_spmm_act(a_cat, x_cat, jnp.zeros((d_idx,), jnp.float32), "none")
    # use_sign=False (JointRIGCN default) -> no sign()

    # ---- RICRD GCNConv + ReLU (dropout is identity at inference) ----
    h_in = jnp.concatenate([ctx, x_features], axis=1)
    a_hat = build_gcn_adjacency(edge_index, n, dtype=jnp.float32)
    xw1 = h_in @ params["w1"]                      # feature transform hoisted out of kernel
    h1 = tiled_spmm_act(a_hat, xw1, params["b1"], "relu")

    # ---- RICLS GCNConv + log_softmax ----
    xw2 = h1 @ params["w2"]
    return tiled_spmm_act(a_hat, xw2, params["b2"], "log_softmax")


# ------------------------------------------------------------------------------ demo

if __name__ == "__main__":
    key = jax.random.PRNGKey(0)
    k_x, k_f, k_w1, k_w2, k_o = jax.random.split(key, 5)

    N, D_IDX, D_FEAT, HIDDEN, N_CLASSES = 8, 16, 8, 32, 7

    # random-index vectors + node features
    x = jax.random.normal(k_x, (N, D_IDX), dtype=jnp.float32)
    x_features = jax.random.normal(k_f, (N, D_FEAT), dtype=jnp.float32)

    # deterministic ring graph (both directions)
    src = jnp.arange(N, dtype=jnp.int32)
    dst = (src + 1) % N
    edge_index = jnp.stack(
        [jnp.concatenate([src, dst]), jnp.concatenate([dst, src])], axis=0
    )

    d_in1 = D_IDX + D_FEAT
    lim1 = (6.0 / (d_in1 + HIDDEN)) ** 0.5
    lim2 = (6.0 / (HIDDEN + N_CLASSES)) ** 0.5
    order_init = jax.random.normal(k_o, (3,), dtype=jnp.float32)  # Embedding(1,1) ~ N(0,1)
    params = dict(
        zeroth=jnp.float32(1.0),
        fst=order_init[0],
        snd=order_init[1],
        trd=order_init[2],
        w1=jax.random.uniform(k_w1, (d_in1, HIDDEN), minval=-lim1, maxval=lim1, dtype=jnp.float32),
        b1=jnp.zeros((HIDDEN,), jnp.float32),
        w2=jax.random.uniform(k_w2, (HIDDEN, N_CLASSES), minval=-lim2, maxval=lim2, dtype=jnp.float32),
        b2=jnp.zeros((N_CLASSES,), jnp.float32),
    )

    out = joint_rigcn_forward(x, x_features, edge_index, params)
    jax.block_until_ready(out)

    # sanity: log_softmax rows sum to ~1 in prob space
    assert out.shape == (N, N_CLASSES)
    row_prob_sum = jnp.sum(jnp.exp(out), axis=1)
    assert bool(jnp.all(jnp.abs(row_prob_sum - 1.0) < 1e-3))

    print("KERNEL_OK")
</pallas_src>

<mosaic_0001>
module attributes {stable_mosaic.version = 11 : i64} {
  func.func @_spmm_act_kernel(%arg0: i32, %arg1: i32, %arg2: memref<16x128xbf16, #tpu.memory_space<vmem>>, %arg3: memref<128x128xbf16, #tpu.memory_space<vmem>>, %arg4: memref<1x128xf32, #tpu.memory_space<vmem>>, %arg5: memref<16x128xf32, #tpu.memory_space<vmem>>, %arg6: memref<16x128xf32, #tpu.memory_space<vmem>>) attributes {dimension_semantics = [#tpu.dimension_semantics<parallel>, #tpu.dimension_semantics<arbitrary>], iteration_bounds = array<i64: 1, 1>, scalar_prefetch = 0 : i64, scratch_operands = 1 : i64, tpu.core_type = #tpu.core_type<tc>, window_params = [{transform_indices = @transform_0, window_bounds = array<i64: 16, 128>}, {transform_indices = @transform_1, window_bounds = array<i64: 128, 128>}, {pipeline_mode = #tpu.pipeline_mode<synchronous>, transform_indices = @transform_2, window_bounds = array<i64: 1, 128>}, {transform_indices = @transform_3, window_bounds = array<i64: 16, 128>}]} {
    %c0_i32 = arith.constant 0 : i32
    %0 = arith.cmpi eq, %arg1, %c0_i32 : i32
    %1 = arith.extui %0 : i1 to i32
    %c0_i32_0 = arith.constant 0 : i32
    %2 = arith.cmpi ne, %1, %c0_i32_0 : i32
    scf.if %2 {
      %cst_10 = arith.constant 0.000000e+00 : f32
      %12 = vector.broadcast %cst_10 : f32 to vector<16x128xf32>
      %c0_11 = arith.constant 0 : index
      %c0_12 = arith.constant 0 : index
      %13 = vector.load %arg6[%c0_11, %c0_12] : memref<16x128xf32, #tpu.memory_space<vmem>>, vector<16x128xf32>
      tpu.vector_store %arg6[%c0_11, %c0_12], %12 {strides = array<i32>} : memref<16x128xf32, #tpu.memory_space<vmem>>, vector<16x128xf32>,
    } else {
    }
    %c0 = arith.constant 0 : index
    %c0_1 = arith.constant 0 : index
    %3 = vector.load %arg6[%c0, %c0_1] : memref<16x128xf32, #tpu.memory_space<vmem>>, vector<16x128xf32>
    %c0_2 = arith.constant 0 : index
    %c0_3 = arith.constant 0 : index
    %4 = vector.load %arg2[%c0_2, %c0_3] : memref<16x128xbf16, #tpu.memory_space<vmem>>, vector<16x128xbf16>
    %c0_4 = arith.constant 0 : index
    %c0_5 = arith.constant 0 : index
    %5 = vector.load %arg3[%c0_4, %c0_5] : memref<128x128xbf16, #tpu.memory_space<vmem>>, vector<128x128xbf16>
    %cst = arith.constant dense<0.000000e+00> : vector<16x128xf32>
    %6 = tpu.matmul %4, %5, %cst {dimension_numbers = #tpu.dot_dimension_numbers<[1], [0], [0], [1], [0, 0, 1, 1], [], []>} : vector<16x128xbf16>, vector<128x128xbf16>, vector<16x128xf32> -> vector<16x128xf32>
    %7 = arith.addf %3, %6 : vector<16x128xf32>
    %c0_6 = arith.constant 0 : index
    %c0_7 = arith.constant 0 : index
    %8 = vector.load %arg6[%c0_6, %c0_7] : memref<16x128xf32, #tpu.memory_space<vmem>>, vector<16x128xf32>
    tpu.vector_store %arg6[%c0_6, %c0_7], %7 {strides = array<i32>} : memref<16x128xf32, #tpu.memory_space<vmem>>, vector<16x128xf32>,
    %c0_i32_8 = arith.constant 0 : i32
    %9 = arith.cmpi eq, %arg1, %c0_i32_8 : i32
    %10 = arith.extui %9 : i1 to i32
    %c0_i32_9 = arith.constant 0 : i32
    %11 = arith.cmpi ne, %10, %c0_i32_9 : i32
    scf.if %11 {
      %c0_10 = arith.constant 0 : index
      %c0_11 = arith.constant 0 : index
      %12 = vector.load %arg6[%c0_10, %c0_11] : memref<16x128xf32, #tpu.memory_space<vmem>>, vector<16x128xf32>
      %c0_12 = arith.constant 0 : index
      %c0_13 = arith.constant 0 : index
      %13 = vector.load %arg4[%c0_12, %c0_13] : memref<1x128xf32, #tpu.memory_space<vmem>>, vector<1x128xf32>
      %14 = vector.broadcast %13 : vector<1x128xf32> to vector<16x128xf32>
      %15 = arith.addf %12, %14 : vector<16x128xf32>
      %c0_14 = arith.constant 0 : index
      %c0_15 = arith.constant 0 : index
      %16 = vector.load %arg5[%c0_14, %c0_15] : memref<16x128xf32, #tpu.memory_space<vmem>>, vector<16x128xf32>
      tpu.vector_store %arg5[%c0_14, %c0_15], %15 {strides = array<i32>} : memref<16x128xf32, #tpu.memory_space<vmem>>, vector<16x128xf32>,
    } else {
    }
    return
  }
  func.func @transform_0(%arg0: i32, %arg1: i32) -> (i32, i32) {
    %c0_i32 = arith.constant 0 : i32
    return %arg0, %arg1 : i32, i32
  }
  func.func @transform_1(%arg0: i32, %arg1: i32) -> (i32, i32) {
    %c0_i32 = arith.constant 0 : i32
    %c0_i32_0 = arith.constant 0 : i32
    return %arg1, %c0_i32 : i32, i32
  }
  func.func @transform_2(%arg0: i32, %arg1: i32) -> (i32, i32) {
    %c0_i32 = arith.constant 0 : i32
    %c0_i32_0 = arith.constant 0 : i32
    %c0_i32_1 = arith.constant 0 : i32
    return %c0_i32, %c0_i32_0 : i32, i32
  }
  func.func @transform_3(%arg0: i32, %arg1: i32) -> (i32, i32) {
    %c0_i32 = arith.constant 0 : i32
    %c0_i32_0 = arith.constant 0 : i32
    return %arg0, %c0_i32 : i32, i32
  }
}

</mosaic_0001>

<bundles_post_ra>
// kernel: tpu_custom_call.1
= control target key start
LH: loop header
LB: loop body
LE: loop exit
PB: predicated region body
PF: predicated region fallthrough
CT: control target
= control target key end

     0   :  { %8 = vsyncpa [#allocation4], 0  ;;  %s400_s0 = inlined_call_operand.hbm [shape: bf16[16,128], index: 0, kind: input, shape index: {}]   ;;  %s401_s1 = inlined_call_operand.hbm [shape: bf16[128,128], index: 1, kind: input, shape index: {}]   ;;  %s402_s2 = inlined_call_operand.vmem [shape: f32[1,128], index: 2, kind: input, shape index: {}]   ;;  %s403_s3 = inlined_call_operand.hbm [shape: f32[16,128], index: 3, kind: output, shape index: {}]  }
   0x1   :  { %9 = vsyncpa [#allocation7], 0 }
   0x2   :  { %10 = vsyncpa [#allocation5], 0  ;;  %s332_s12 = smov [#allocation3]   ;;  %s260_s16 = scalar_lea.hbm %s400_s0, 128 }
   0x3   :  { %s16_s13 = sshll.u32 %s332_s12, 4  ;;  %p261_p0 = scmp.ne.s32.totalorder %s400_s0, %s260_s16  ;;  %s17_s13 = int_to_ptr.vmem [resolvable:$true] %s16_s13 }
   0x4   :  { %p264_p1 = scmp.lt.u32.totalorder %s260_s16, %s400_s0 }
   0x6   :  { %p266_p2 = pnand %p264_p1, %p261_p0 }
   0x8   :  { %269 = shalt.err (!%p266_p2)
}
   0x9   :  { %s270_s21 = scalar_lea.vmem %s17_s13, 128  ;;  %p275_p4 = scmp.lt.s32.totalorder %s17_s13, %s17_s13 }
   0xa   :  { %p271_p3 = scmp.ne.s32.totalorder %s17_s13, %s270_s21  ;;  %p276_p5 = scmp.lt.s32.totalorder %s270_s21, %s270_s21 }
   0xc   :  { %p277_p6 = por %p276_p5, %p275_p4 }
   0xe   :  { %p278_p7 = pnand %p277_p6, %p271_p3 }
  0x10   :  { %281 = shalt.err (!%p278_p7)
}
  0x11   :  { %s333_s22 = smov 64   ;;  %s334_s23 = smov 4  }
  0x12   :  { %22 = dma.hbm_to_vmem [thread:$0]  %s400_s0, 128, %s17_s13, [#allocation4], %s333_s22, %s333_s22, %s334_s23  }
  0x13   :  { %s335_s26 = smov [#allocation6]   ;;  %s282_s30 = scalar_lea.hbm %s401_s1, 1024 }
  0x14   :  { %s28_s27 = sshll.u32 %s335_s26, 4  ;;  %p283_p8 = scmp.ne.s32.totalorder %s401_s1, %s282_s30  ;;  %s29_s27 = int_to_ptr.vmem [resolvable:$true] %s28_s27 }
  0x15   :  { %p286_p9 = scmp.lt.u32.totalorder %s282_s30, %s401_s1 }
  0x17   :  { %p288_p10 = pnand %p286_p9, %p283_p8 }
  0x19   :  { %291 = shalt.err (!%p288_p10)
}
  0x1a   :  { %s292_s8 = scalar_lea.vmem %s29_s27, 1024  ;;  %p297_p12 = scmp.lt.s32.totalorder %s29_s27, %s29_s27 }
  0x1b   :  { %p293_p11 = scmp.ne.s32.totalorder %s29_s27, %s292_s8  ;;  %p298_p13 = scmp.lt.s32.totalorder %s292_s8, %s292_s8 }
  0x1d   :  { %p299_p0 = por %p298_p13, %p297_p12 }
  0x1f   :  { %p300_p1 = pnand %p299_p0, %p293_p11 }
  0x21   :  { %303 = shalt.err (!%p300_p1)
}
  0x22   :  { %34 = dma.hbm_to_vmem [thread:$0]  %s401_s1, 1024, %s29_s27, [#allocation7], %s333_s22, %s333_s22, %s334_s23  }
  0x23   :  { %326 = dma.done.wait [#allocation4], 128  }
  0x24   :  { %327 = vsyncadd [#allocation4], 4294967168 }
  0x25   :  { %328 = dma.done.wait [#allocation7], 1024  }
  0x26   :  { %329 = vsyncadd [#allocation7], 4294966272  ;;  %v336_v0 = vmov 0.0   ;;  %vm337_vm0 = vmmov 0   ;;  %v251_v1 = vld [vmem:[#allocation6] sm:$0xff]   ;;  %v252_v2 = vld [vmem:[#allocation6 + $0x8] sm:$0xff]  }
  0x27   :  { %222 = vmatprep.subr.bf16.mxu0 %v336_v0  ;;  %238 = vmatprep.mubr.msk.bf16.mxu0 %vm337_vm0, %v336_v0  ;;  %v253_v3 = vld [vmem:[#allocation6 + $0x10] sm:$0xff]   ;;  %v254_v4 = vld [vmem:[#allocation6 + $0x18] sm:$0xff]   ;;  %v255_v5 = vld [vmem:[#allocation6 + $0x20] sm:$0xff]   ;;  %s338_s11 = smov [#allocation8]  }
  0x28   :  { %223 = vmatpush3.bf16.msra.mxu0 %v251_v1  ;;  %v256_v6 = vld [vmem:[#allocation6 + $0x28] sm:$0xff]   ;;  %v257_v7 = vld [vmem:[#allocation6 + $0x30] sm:$0xff]   ;;  %v258_v8 = vld [vmem:[#allocation6 + $0x38] sm:$0xff]   ;;  %s190_s12 = sshll.u32 %s338_s11, 4  ;;  %s191_s12 = int_to_ptr.vmem [resolvable:$true] %s190_s12 }
  0x29   :  { %224 = vmatprep.subr.bf16.mxu0 %v336_v0  ;;  %v259_v9 = vld [vmem:[#allocation3] sm:$0xff]   ;;  %s304_s13 = scalar_lea.vmem %s191_s12, 256  ;;  %p309_p3 = scmp.lt.s32.totalorder %s191_s12, %s191_s12 }
  0x2a   :  { %v212_v10 = vld [vmem:[%s402_s2] ss:$0 sm:$0xff]  ;;  %p305_p2 = scmp.ne.s32.totalorder %s191_s12, %s304_s13  ;;  %p310_p4 = scmp.lt.s32.totalorder %s304_s13, %s304_s13 }
  0x2c   :  { %225 = vmatpush3.bf16.msra.mxu0 %v252_v2  ;;  %p311_p5 = por %p310_p4, %p309_p3 }
  0x2d   :  { %226 = vmatprep.subr.bf16.mxu0 %v336_v0 }
  0x2e   :  { %p312_p6 = pnand %p311_p5, %p305_p2 }
  0x30   :  { %227 = vmatpush3.bf16.msra.mxu0 %v253_v3 }
  0x31   :  { %228 = vmatprep.subr.bf16.mxu0 %v336_v0 }
  0x34   :  { %229 = vmatpush3.bf16.msra.mxu0 %v254_v4 }
  0x35   :  { %230 = vmatprep.subr.bf16.mxu0 %v336_v0 }
  0x38   :  { %231 = vmatpush3.bf16.msra.mxu0 %v255_v5 }
  0x39   :  { %232 = vmatprep.subr.bf16.mxu0 %v336_v0 }
  0x3c   :  { %233 = vmatpush3.bf16.msra.mxu0 %v256_v6 }
  0x3d   :  { %234 = vmatprep.subr.bf16.mxu0 %v336_v0 }
  0x40   :  { %235 = vmatpush3.bf16.msra.mxu0 %v257_v7 }
  0x41   :  { %236 = vmatprep.subr.bf16.mxu0 %v336_v0 }
  0x44   :  { %237 = vmatpush3.bf16.msra.mxu0 %v258_v8 }
  0x47   :  { %239 = vmatmul.mubr.bf16.vlgmr.msra.gmra.mrb[0].mxu0 %v259_v9 }
 0x11a   :  { %v158_v11 = vpop.f32.mrb[0].mxu0 }
 0x11b   :  { %v181_v12 = vadd.f32 %v212_v10, %v158_v11  ;;  %v240_v13 = vpop.f32.mrb[1].mxu0 }
 0x11c   :  { %v161_v14 = vpop.f32.mrb[2].mxu0 }
 0x11d   :  { %183 = vst [vmem:[#allocation8] sm:$0xff] %v181_v12  ;;  %v182_v15 = vadd.f32 %v212_v10, %v161_v14  ;;  %v241_v16 = vpop.f32.mrb[3].mxu0 }
 0x11f   :  { %184 = vst [vmem:[#allocation8 + $0x8] sm:$0xff] %v182_v15 }
 0x120   :  { %315 = shalt.err (!%p312_p6)
}
 0x121   :  { %s316_s15 = scalar_lea.hbm %s403_s3, 256 }
 0x122   :  { %p317_p7 = scmp.ne.s32.totalorder %s403_s3, %s316_s15  ;;  %p320_p8 = scmp.lt.u32.totalorder %s316_s15, %s403_s3 }
 0x124   :  { %p322_p9 = pnand %p320_p8, %p317_p7 }
 0x126   :  { %325 = shalt.err (!%p322_p9)
}
 0x127   :  { %s339_s20 = smov 128   ;;  %s340_s21 = smov 8  }
 0x128   :  { %196 = dma.vmem_to_hbm [thread:$0]  %s191_s12, 256, %s403_s3, [#allocation5], %s339_s20, %s339_s20, %s340_s21  }
 0x129   :  { %330 = dma.done.wait [#allocation5], 256  }
 0x12a   :  { %331 = vsyncadd [#allocation5], 4294967040 }
 0x12b   :  { %200 = vsyncpa [#allocation4], 1 }
 0x12c   :  { %201 = vsyncpa [#allocation7], 1 }
 0x12d   :  { %202 = vsyncpa [#allocation5], 1 }

</bundles_post_ra>
